<compile_context>
chip_gen: v7x
topology: tpu7x:2x2x1
jax: 0.10.0
libtpu: 0.0.40
codegen_flags: <defaults>
</compile_context>

<pallas_src>
import functools

import jax
import jax.numpy as jnp
from jax.experimental import pallas as pl
from jax.experimental.pallas import tpu as pltpu


def _convt_tanh_kernel(w_ref, x_ref, b_ref, o_ref, *, cout, khw):
    # w_ref: (Cin, N) VMEM f32, N = Cout*kH*kW (co-major, matches weight.reshape)
    # x_ref: (Cin, M) VMEM f32, M = H*W (free reshape of NCHW, batch = 1)
    # b_ref: (Cout,)  SMEM f32
    # o_ref: (N, M)   VMEM f32

    # One tiny XLU transpose (half a vreg), then a plain f32 MXU matmul
    # (N, K) x (K, M) with K = Cin = 8, accumulated in f32.
    w_t = jnp.transpose(w_ref[...], (1, 0))                              # (N, Cin)
    acc = jnp.dot(w_t, x_ref[...], preferred_element_type=jnp.float32)   # (N, M) f32

    # Per-channel band: rows [c*khw, (c+1)*khw) all share bias[c].
    # khw = 16 -> every band is 2 full sublane tiles, so slices/stores are tile-aligned.
    # Static unroll (cout = 4): scalar SMEM read + VPU add + EUP tanh + dense store per band.
    for c in range(cout):
        band = acc[c * khw:(c + 1) * khw, :] + b_ref[c]
        o_ref[c * khw:(c + 1) * khw, :] = jnp.tanh(band)


def convt_tanh_matmul(w_mat, x_cm, bias, *, cout, khw):
    cin, n_cols = w_mat.shape                   # (8, 64)
    _, m = x_cm.shape                           # (8, 196)
    kernel = functools.partial(_convt_tanh_kernel, cout=cout, khw=khw)
    return pl.pallas_call(
        kernel,
        out_shape=jax.ShapeDtypeStruct((n_cols, m), jnp.float32),
        in_specs=[
            pl.BlockSpec(memory_space=pltpu.MemorySpace.VMEM),   # weight matrix (8, 64)
            pl.BlockSpec(memory_space=pltpu.MemorySpace.VMEM),   # input matrix  (8, 196)
            pl.BlockSpec(memory_space=pltpu.MemorySpace.SMEM),   # bias scalars  (4,)
        ],
        out_specs=pl.BlockSpec(memory_space=pltpu.MemorySpace.VMEM),
        cost_estimate=pl.CostEstimate(
            flops=2 * cin * n_cols * m,
            transcendentals=n_cols * m,
            bytes_accessed=4 * (cin * n_cols + cin * m + cout + n_cols * m),
        ),
    )(w_mat, x_cm, bias)


def model_forward(x, weight, bias):
    """x: (1, Cin, H, W) NCHW; weight: (Cin, Cout, kH, kW); bias: (Cout,)."""
    n, cin, h, w = x.shape
    _, cout, kh, kw = weight.shape
    stride, pad = 4, 2
    assert n == 1 and kh == stride and kw == stride
    # Note: with batch > 1 the batch dim would become a leading "parallel" grid axis
    # (lets the 2nd TensorCore on v7x participate); for batch = 1, grid=() is best.

    x_cm = x.reshape(cin, h * w)                 # free reshape (contiguous), no transpose HLO
    w_mat = weight.reshape(cin, cout * kh * kw)  # free reshape of the PyTorch weight layout

    out_nm = convt_tanh_matmul(w_mat, x_cm, bias, cout=cout, khw=kh * kw)  # (Cout*kH*kW, H*W)

    # Stride-4 re-interleave + crop: plain-JAX glue, one tiny transpose/slice fusion in XLA.
    out = out_nm.reshape(cout, kh, kw, h, w)      # (co, p, q, i, j)
    out = jnp.transpose(out, (0, 3, 1, 4, 2))     # (co, i, p, j, q)
    out = out.reshape(cout, h * stride, w * stride)
    out = out[:, pad:h * stride - pad, pad:w * stride - pad]
    return out[None]                              # (1, Cout, 52, 52)


def model_forward_ref(x, weight, bias):
    """Pure-JAX f32 reference (same math, no Pallas)."""
    n, cin, h, w = x.shape
    _, cout, kh, kw = weight.shape
    stride, pad = 4, 2
    out = jnp.einsum('chw,copq->ohpwq', x[0], weight,
                     precision=jax.lax.Precision.HIGHEST)
    out = out + bias[:, None, None, None, None]
    out = out.reshape(cout, h * stride, w * stride)
    out = out[:, pad:h * stride - pad, pad:w * stride - pad]
    return jnp.tanh(out)[None]


if __name__ == "__main__":
    key = jax.random.PRNGKey(0)
    kx, kw_, kb = jax.random.split(key, 3)

    # Shapes implied by the module: x1 = (1, 8, 14, 14), weight = (8, 4, 4, 4), bias = (4,)
    x1 = jax.random.normal(kx, (1, 8, 14, 14), dtype=jnp.float32)
    weight = jax.random.normal(kw_, (8, 4, 4, 4), dtype=jnp.float32) * 0.1
    bias = jax.random.normal(kb, (4,), dtype=jnp.float32) * 0.1

    out = jax.jit(model_forward)(x1, weight, bias)
    out = jax.block_until_ready(out)

    ref = model_forward_ref(x1, weight, bias)
    assert out.shape == (1, 4, 52, 52), out.shape
    # f32 MXU matmul (K = 8) vs HIGHEST-precision reference: expected error ~1e-6; tolerance
    # kept at 5e-3 only to stay robust to any reduced-precision f32 matmul pass selection.
    assert jnp.allclose(out, ref, rtol=5e-3, atol=5e-3), "mismatch vs reference"

    print("KERNEL_OK")
</pallas_src>

<mosaic_0001>
module attributes {stable_mosaic.version = 11 : i64} {
  func.func @_convt_tanh_kernel(%arg0: memref<8x64xf32, #tpu.memory_space<vmem>>, %arg1: memref<8x196xf32, #tpu.memory_space<vmem>>, %arg2: memref<4xf32, #tpu.memory_space<smem>>, %arg3: memref<64x196xf32, #tpu.memory_space<vmem>>) attributes {dimension_semantics = [], scalar_prefetch = 0 : i64, scratch_operands = 0 : i64, tpu.core_type = #tpu.core_type<tc>} {
    %c0 = arith.constant 0 : index
    %c0_0 = arith.constant 0 : index
    %0 = vector.load %arg0[%c0, %c0_0] : memref<8x64xf32, #tpu.memory_space<vmem>>, vector<8x64xf32>
    %1 = tpu.transpose %0, [1, 0] : vector<8x64xf32> -> vector<64x8xf32>
    %c0_1 = arith.constant 0 : index
    %c0_2 = arith.constant 0 : index
    %2 = vector.load %arg1[%c0_1, %c0_2] : memref<8x196xf32, #tpu.memory_space<vmem>>, vector<8x196xf32>
    %cst = arith.constant dense<0.000000e+00> : vector<64x196xf32>
    %3 = tpu.matmul %1, %2, %cst {dimension_numbers = #tpu.dot_dimension_numbers<[1], [0], [0], [1], [0, 0, 1, 1], [], []>} : vector<64x8xf32>, vector<8x196xf32>, vector<64x196xf32> -> vector<64x196xf32>
    %4 = vector.extract_strided_slice %3 {offsets = [0, 0], sizes = [16, 196], strides = [1, 1]} : vector<64x196xf32> to vector<16x196xf32>
    %c0_3 = arith.constant 0 : index
    %5 = memref.load %arg2[%c0_3] : memref<4xf32, #tpu.memory_space<smem>>
    %6 = vector.broadcast %5 : f32 to vector<16x196xf32>
    %7 = arith.addf %4, %6 : vector<16x196xf32>
    %8 = math.tanh %7 : vector<16x196xf32>
    %c0_4 = arith.constant 0 : index
    %c0_5 = arith.constant 0 : index
    %9 = vector.load %arg3[%c0_4, %c0_5] : memref<64x196xf32, #tpu.memory_space<vmem>>, vector<16x196xf32>
    tpu.vector_store %arg3[%c0_4, %c0_5], %8 {strides = array<i32>} : memref<64x196xf32, #tpu.memory_space<vmem>>, vector<16x196xf32>,
    %10 = vector.extract_strided_slice %3 {offsets = [16, 0], sizes = [16, 196], strides = [1, 1]} : vector<64x196xf32> to vector<16x196xf32>
    %c1 = arith.constant 1 : index
    %11 = memref.load %arg2[%c1] : memref<4xf32, #tpu.memory_space<smem>>
    %12 = vector.broadcast %11 : f32 to vector<16x196xf32>
    %13 = arith.addf %10, %12 : vector<16x196xf32>
    %14 = math.tanh %13 : vector<16x196xf32>
    %c16 = arith.constant 16 : index
    %c0_6 = arith.constant 0 : index
    %15 = vector.load %arg3[%c16, %c0_6] : memref<64x196xf32, #tpu.memory_space<vmem>>, vector<16x196xf32>
    tpu.vector_store %arg3[%c16, %c0_6], %14 {strides = array<i32>} : memref<64x196xf32, #tpu.memory_space<vmem>>, vector<16x196xf32>,
    %16 = vector.extract_strided_slice %3 {offsets = [32, 0], sizes = [16, 196], strides = [1, 1]} : vector<64x196xf32> to vector<16x196xf32>
    %c2 = arith.constant 2 : index
    %17 = memref.load %arg2[%c2] : memref<4xf32, #tpu.memory_space<smem>>
    %18 = vector.broadcast %17 : f32 to vector<16x196xf32>
    %19 = arith.addf %16, %18 : vector<16x196xf32>
    %20 = math.tanh %19 : vector<16x196xf32>
    %c32 = arith.constant 32 : index
    %c0_7 = arith.constant 0 : index
    %21 = vector.load %arg3[%c32, %c0_7] : memref<64x196xf32, #tpu.memory_space<vmem>>, vector<16x196xf32>
    tpu.vector_store %arg3[%c32, %c0_7], %20 {strides = array<i32>} : memref<64x196xf32, #tpu.memory_space<vmem>>, vector<16x196xf32>,
    %22 = vector.extract_strided_slice %3 {offsets = [48, 0], sizes = [16, 196], strides = [1, 1]} : vector<64x196xf32> to vector<16x196xf32>
    %c3 = arith.constant 3 : index
    %23 = memref.load %arg2[%c3] : memref<4xf32, #tpu.memory_space<smem>>
    %24 = vector.broadcast %23 : f32 to vector<16x196xf32>
    %25 = arith.addf %22, %24 : vector<16x196xf32>
    %26 = math.tanh %25 : vector<16x196xf32>
    %c48 = arith.constant 48 : index
    %c0_8 = arith.constant 0 : index
    %27 = vector.load %arg3[%c48, %c0_8] : memref<64x196xf32, #tpu.memory_space<vmem>>, vector<16x196xf32>
    tpu.vector_store %arg3[%c48, %c0_8], %26 {strides = array<i32>} : memref<64x196xf32, #tpu.memory_space<vmem>>, vector<16x196xf32>,
    return
  }
}

</mosaic_0001>

<bundles_post_ra>
// kernel: model_forward.1
= control target key start
LH: loop header
LB: loop body
LE: loop exit
PB: predicated region body
PF: predicated region fallthrough
CT: control target
= control target key end

     0   :  { %8 = vsyncpa [#allocation3], 0  ;;  %s426_s0 = inlined_call_operand.vmem [shape: f32[8,64], index: 0, kind: input, shape index: {}]   ;;  %s427_s1 = inlined_call_operand.vmem [shape: f32[8,196], index: 1, kind: input, shape index: {}]   ;;  %s428_s2 = inlined_call_operand.hbm [shape: f32[4], index: 2, kind: input, shape index: {}]   ;;  %s429_s3 = inlined_call_operand.vmem [shape: f32[64,196], index: 3, kind: output, shape index: {}]  }
   0x1   :  { %s307_s14 = scalar_lea.hbm %s428_s2, 16 }
   0x2   :  { %p308_p0 = scmp.ne.s32.totalorder %s428_s2, %s307_s14  ;;  %p311_p1 = scmp.lt.u32.totalorder %s307_s14, %s428_s2 }
   0x4   :  { %p313_p2 = pnand %p311_p1, %p308_p0 }
   0x6   :  { %316 = shalt.err (!%p313_p2)
}
   0x7   :  { %s319_s19 = smov [#allocation2]  }
   0x8   :  { %20 = dma.hbm_to_smem %s428_s2, 16, %s319_s19, [#allocation3]  }
   0x9   :  { %317 = dma.done.wait [#allocation3], 16  }
   0xa   :  { %318 = vsyncadd [#allocation3], 4294967280 }
   0xb   :  { %24 = sfence }
   0xc   :  { %v25_v0 = vld [vmem:[%s426_s0] sm:$0xff]  ;;  %v59_v1 = vld [vmem:[%s427_s1 + $0x8] sm:$0xff]  ;;  %v320_v3 = vmov 0.0   ;;  %vm60_vm0 = vcmask 64512   ;;  %s198_s0 = sld [smem:[#allocation2]]  ;;  %s269_s2 = sld [smem:[#allocation2 + $0x2]] }
   0xd   :  { %v58_v2 = vld [vmem:[%s427_s1] sm:$0xff]  ;;  %26 = vxpose.xlu0.b32.start.end [1/1] (short) (narrow) %v25_v0, 64  ;;  %85 = vmatprep.subr.mxu0 %v59_v1  ;;  %s268_s1 = sld [smem:[#allocation2 + $0x1]]  ;;  %vm209_vm1 = vcmask 556032   ;;  %s270_s30 = sld [smem:[#allocation2 + $0x3]] }
   0xe   :  { %86 = vmatpush1.msra.mxu0 %v58_v2  ;;  %149 = vmatprep.mubr.f32.mxu0 %v320_v3 }
   0xf   :  { %271 = vmatprep.subr.mxu1 %v59_v1  ;;  %173 = vmatprep.mubr.f32.mxu1 %v320_v3 }
  0x10   :  { %272 = vmatpush1.msra.mxu1 %v58_v2 }
  0x12   :  { %v199_v12 = vstv %s198_s0  ;;  %v228_v32 = vstv %s269_s2 }
  0x13   :  { %v214_v21 = vstv %s268_s1  ;;  %v242_v45 = vstv %s270_s30 }
  0x8d   :  { %v42_v4 = vpop.trf.xlu0 }
  0x8e   :  { %260 = vmatmul.mubr.msk.f32.vlgmr.msra.gmra.mrb[0].mxu0 %vm60_vm0, %v42_v4 }
  0x8f   :  { %155 = vmatprep.mubr.f32.mxu0 %v320_v3 }
  0x91   :  { %v43_v5 = vpop.trf.xlu0 }
  0x92   :  { %261 = vmatmul.mubr.msk.f32.gmra.mrb[2].mxu0 %vm60_vm0, %v43_v5 }
  0x93   :  { %161 = vmatprep.mubr.f32.mxu0 %v320_v3 }
  0x95   :  { %v44_v6 = vpop.trf.xlu0 }
  0x96   :  { %262 = vmatmul.mubr.msk.f32.gmra.mrb[4].mxu0 %vm60_vm0, %v44_v6 }
  0x97   :  { %167 = vmatprep.mubr.f32.mxu0 %v320_v3 }
  0x99   :  { %v45_v7 = vpop.trf.xlu0 }
  0x9a   :  { %263 = vmatmul.mubr.msk.f32.gmra.mrb[6].mxu0 %vm60_vm0, %v45_v7 }
  0x9d   :  { %v46_v8 = vpop.trf.xlu0 }
  0x9e   :  { %264 = vmatmul.mubr.msk.f32.vlgmr.msra.gmra.mrb[0].mxu1 %vm60_vm0, %v46_v8 }
  0x9f   :  { %179 = vmatprep.mubr.f32.mxu1 %v320_v3 }
  0xa1   :  { %v47_v9 = vpop.trf.xlu0 }
  0xa2   :  { %265 = vmatmul.mubr.msk.f32.gmra.mrb[2].mxu1 %vm60_vm0, %v47_v9 }
  0xa3   :  { %185 = vmatprep.mubr.f32.mxu1 %v320_v3 }
  0xa5   :  { %v48_v10 = vpop.trf.xlu0 }
  0xa6   :  { %266 = vmatmul.mubr.msk.f32.gmra.mrb[4].mxu1 %vm60_vm0, %v48_v10 }
  0xa7   :  { %191 = vmatprep.mubr.f32.mxu1 %v320_v3 }
  0xa9   :  { %v49_v11 = vpop.trf.xlu0 }
  0xaa   :  { %267 = vmatmul.mubr.msk.f32.gmra.mrb[6].mxu1 %vm60_vm0, %v49_v11 }
 0x161   :  { %v151_v13 = vpop.f32.mrb[0].mxu0 }
 0x162   :  { %v200_v14 = vadd.f32 %v199_v12, %v151_v13  ;;  %v153_v15 = vpop.f32.mrb[1].mxu0 }
 0x163   :  { %v201_v16 = vadd.f32 %v199_v12, %v153_v15 }
 0x164   :  { %275 = vtanh.f32 %v200_v14 }
 0x165   :  { %277 = vtanh.f32 %v201_v16  ;;  %v157_v17 = vpop.f32.mrb[2].mxu0 }
 0x166   :  { %v202_v18 = vadd.f32 %v199_v12, %v157_v17  ;;  %v159_v19 = vpop.f32.mrb[3].mxu0 }
 0x167   :  { %v203_v20 = vadd.f32 %v199_v12, %v159_v19 }
 0x168   :  { %279 = vtanh.f32 %v202_v18 }
 0x169   :  { %281 = vtanh.f32 %v203_v20  ;;  %v163_v22 = vpop.f32.mrb[4].mxu0 }
 0x16a   :  { %v215_v23 = vadd.f32 %v214_v21, %v163_v22  ;;  %v165_v24 = vpop.f32.mrb[5].mxu0 }
 0x16b   :  { %v216_v25 = vadd.f32 %v214_v21, %v165_v24 }
 0x16c   :  { %283 = vtanh.f32 %v215_v23 }
 0x16d   :  { %285 = vtanh.f32 %v216_v25  ;;  %v169_v26 = vpop.f32.mrb[6].mxu0 }
 0x16e   :  { %v276_v27 = vpop.eup %275  ;;  %v217_v28 = vadd.f32 %v214_v21, %v169_v26  ;;  %v171_v29 = vpop.f32.mrb[7].mxu0 }
 0x16f   :  { %v278_v30 = vpop.eup %277  ;;  %208 = vst [vmem:[%s429_s3] sm:$0xff] %v276_v27  ;;  %v218_v31 = vadd.f32 %v214_v21, %v171_v29 }
 0x170   :  { %210 = vst.msk [vmem:[%s429_s3 + $0x8] sm:$0xff] %vm209_vm1, %v278_v30  ;;  %287 = vtanh.f32 %v217_v28 }
 0x171   :  { %289 = vtanh.f32 %v218_v31  ;;  %v175_v33 = vpop.f32.mrb[0].mxu1 }
 0x172   :  { %v280_v34 = vpop.eup %279  ;;  %v229_v35 = vadd.f32 %v228_v32, %v175_v33  ;;  %v177_v36 = vpop.f32.mrb[1].mxu1 }
 0x173   :  { %v282_v37 = vpop.eup %281  ;;  %211 = vst [vmem:[%s429_s3 + $0x10] sm:$0xff] %v280_v34  ;;  %v230_v38 = vadd.f32 %v228_v32, %v177_v36 }
 0x174   :  { %212 = vst.msk [vmem:[%s429_s3 + $0x18] sm:$0xff] %vm209_vm1, %v282_v37  ;;  %291 = vtanh.f32 %v229_v35 }
 0x175   :  { %293 = vtanh.f32 %v230_v38  ;;  %v181_v39 = vpop.f32.mrb[2].mxu1 }
 0x176   :  { %v284_v40 = vpop.eup %283  ;;  %v231_v41 = vadd.f32 %v228_v32, %v181_v39  ;;  %v183_v42 = vpop.f32.mrb[3].mxu1 }
 0x177   :  { %v286_v43 = vpop.eup %285  ;;  %223 = vst [vmem:[%s429_s3 + $0x20] sm:$0xff] %v284_v40  ;;  %v232_v44 = vadd.f32 %v228_v32, %v183_v42 }
 0x178   :  { %224 = vst.msk [vmem:[%s429_s3 + $0x28] sm:$0xff] %vm209_vm1, %v286_v43  ;;  %295 = vtanh.f32 %v231_v41 }
 0x179   :  { %297 = vtanh.f32 %v232_v44  ;;  %v187_v46 = vpop.f32.mrb[4].mxu1 }
 0x17a   :  { %v288_v47 = vpop.eup %287  ;;  %v243_v48 = vadd.f32 %v242_v45, %v187_v46  ;;  %v189_v49 = vpop.f32.mrb[5].mxu1 }
 0x17b   :  { %v290_v50 = vpop.eup %289  ;;  %225 = vst [vmem:[%s429_s3 + $0x30] sm:$0xff] %v288_v47  ;;  %v244_v51 = vadd.f32 %v242_v45, %v189_v49 }
 0x17c   :  { %226 = vst.msk [vmem:[%s429_s3 + $0x38] sm:$0xff] %vm209_vm1, %v290_v50  ;;  %299 = vtanh.f32 %v243_v48 }
 0x17d   :  { %301 = vtanh.f32 %v244_v51  ;;  %v193_v52 = vpop.f32.mrb[6].mxu1 }
 0x17e   :  { %v292_v53 = vpop.eup %291  ;;  %v245_v54 = vadd.f32 %v242_v45, %v193_v52  ;;  %v195_v55 = vpop.f32.mrb[7].mxu1 }
 0x17f   :  { %v294_v56 = vpop.eup %293  ;;  %237 = vst [vmem:[%s429_s3 + $0x40] sm:$0xff] %v292_v53  ;;  %v246_v57 = vadd.f32 %v242_v45, %v195_v55 }
 0x180   :  { %238 = vst.msk [vmem:[%s429_s3 + $0x48] sm:$0xff] %vm209_vm1, %v294_v56  ;;  %303 = vtanh.f32 %v245_v54 }
 0x181   :  { %305 = vtanh.f32 %v246_v57 }
 0x182   :  { %v296_v58 = vpop.eup %295 }
 0x183   :  { %v298_v59 = vpop.eup %297  ;;  %239 = vst [vmem:[%s429_s3 + $0x50] sm:$0xff] %v296_v58 }
 0x184   :  { %240 = vst.msk [vmem:[%s429_s3 + $0x58] sm:$0xff] %vm209_vm1, %v298_v59 }
 0x186   :  { %v300_v60 = vpop.eup %299 }
 0x187   :  { %v302_v61 = vpop.eup %301  ;;  %251 = vst [vmem:[%s429_s3 + $0x60] sm:$0xff] %v300_v60 }
 0x188   :  { %252 = vst.msk [vmem:[%s429_s3 + $0x68] sm:$0xff] %vm209_vm1, %v302_v61 }
 0x18a   :  { %v304_v62 = vpop.eup %303 }
 0x18b   :  { %v306_v63 = vpop.eup %305  ;;  %253 = vst [vmem:[%s429_s3 + $0x70] sm:$0xff] %v304_v62 }
 0x18c   :  { %254 = vst.msk [vmem:[%s429_s3 + $0x78] sm:$0xff] %vm209_vm1, %v306_v63 }
 0x18d   :  { %259 = vsyncpa [#allocation3], 1 }

</bundles_post_ra>
